<compile_context>
chip_gen: v7x
topology: tpu7x:2x2x1
jax: 0.10.0
libtpu: 0.0.40
codegen_flags: <defaults>
</compile_context>

<pallas_src>
import math
import functools

import jax
import jax.numpy as jnp
from jax.experimental import pallas as pl
from jax.experimental.pallas import tpu as pltpu


def _round_up(x, m):
    return ((x + m - 1) // m) * m


def _choose_tm(n, cap=512):
    """Row (M) tile: multiple of 8, as large as possible.  Prefer an exact divisor of the
    8-aligned row count (no row padding of adj/h0/out) and >= 2 row tiles so the 'parallel'
    grid axis can spread across both v7x TensorCores (megacore on v5e/v6e)."""
    n8 = _round_up(n, 8)
    cap = max(8, min(cap, n8) // 8 * 8)
    if n8 <= 16:
        return n8
    exact = 0
    for t in range(cap, 7, -8):                      # largest exact divisor, >= 2 tiles
        if n8 % t == 0 and n8 // t >= 2:
            exact = t
            break
    if exact >= 128:
        return exact
    t = cap                                          # big (possibly padding) tile,
    while t > 8 and _round_up(n8, t) // t < 2:       # halved until >= 2 row tiles
        t = max(8, (t // 2) // 8 * 8)
    return max(t, exact)


def _choose_tk(n, cap=1024):
    """Contraction (K) tile: multiple of 128.  Moderate n -> one K step (x fully resident);
    large n -> largest multiple of 128 <= cap dividing the 128-aligned extent (minimal
    column padding of adj)."""
    nk = _round_up(n, 128)
    if nk <= cap:
        return nk
    for t in range(cap // 128 * 128, 127, -128):
        if nk % t == 0:
            return t
    return 128


def _vmem_limit_bytes():
    """Generation-dependent VMEM budget: v5e/v6e have 128 MiB physical, v7x only 64 MiB."""
    try:
        cap = int(getattr(pltpu.get_tpu_info(), "vmem_capacity_bytes", 0))
    except Exception:
        cap = 0
    if cap <= 0:
        return 48 * 1024 * 1024                      # conservative, v7x-safe fallback
    return min(cap - 16 * 1024 * 1024, 96 * 1024 * 1024)


def _prep(a, rows, cols, dtype):
    """Cast to `dtype` and zero-pad to (rows, cols).  Both steps are skipped when already
    satisfied, so pre-padded / pre-cast inputs (e.g. a shared adj across GCNII layers)
    incur zero extra HBM traffic here."""
    if a.dtype != dtype:
        a = a.astype(dtype)
    if a.shape == (rows, cols):
        return a
    return jnp.zeros((rows, cols), dtype).at[:a.shape[0], :a.shape[1]].set(a)


def _gcn_kernel(scalars_ref, adj_ref, x_ref, h0_ref, w_ref, *rest, residual):
    if residual:
        xres_ref, out_ref, acc_ref = rest
    else:
        out_ref, acc_ref = rest

    k = pl.program_id(1)

    @pl.when(k == 0)
    def _():
        acc_ref[...] = jnp.zeros_like(acc_ref)

    # Partial sum of hi = adj @ x for this (row-tile, k-tile): bf16 operands, f32 accumulate.
    acc_ref[...] += jnp.dot(adj_ref[...], x_ref[...],
                            preferred_element_type=jnp.float32)

    @pl.when(k == pl.num_programs(1) - 1)
    def _():
        theta = scalars_ref[0]
        alpha = scalars_ref[1]
        hi = acc_ref[...]                                            # f32
        support = (1.0 - alpha) * hi + alpha * h0_ref[...].astype(jnp.float32)
        out = theta * jnp.dot(support.astype(w_ref.dtype), w_ref[...],
                              preferred_element_type=jnp.float32)
        out = out + (1.0 - theta) * support
        if residual:
            out = out + xres_ref[...].astype(jnp.float32)
        out_ref[...] = out.astype(out_ref.dtype)


def graph_convolution(x, adj, h0, weight, lamda, alpha, l, *,
                      residual=False, matmul_dtype=jnp.bfloat16,
                      tm=None, tk=None):
    """Pallas implementation of GraphConvolution.forward (variant=False)."""
    N, F = x.shape
    F_out = weight.shape[1]
    assert adj.shape == (N, N)
    assert h0.shape == (N, F)
    assert weight.shape[0] == F           # non-variant: in_features == F
    # The module's `theta*(support@W) + (1-theta)*support` (and the residual add)
    # require out_features == in_features.
    assert F_out == F, "GraphConvolution (variant=False) requires out_features == in_features"

    # Runtime scalars in SMEM -> one compiled kernel serves every layer index l.
    scalars = jnp.array([math.log(lamda / l + 1.0), float(alpha)], dtype=jnp.float32)

    # ---- tile sizes --------------------------------------------------------
    if tm is None:
        tm = _choose_tm(N)
    if tk is None:
        tk = _choose_tk(N)
    assert tm % 8 == 0 and tk % 128 == 0
    Fp = _round_up(F, 128)                # lane-dense feature dim (F == F_out)
    Nr = _round_up(N, tm)                 # row extent (adj rows / h0 / out)
    Nk = _round_up(N, tk)                 # contraction extent (adj cols / x rows)
    Nx = max(Nr, Nk) if residual else Nk  # x row extent (reused as the residual operand)

    # ---- pad / cast only where actually needed -----------------------------
    adj_p = _prep(adj, Nr, Nk, matmul_dtype)     # bf16 halves the dominant HBM stream
    x_p = _prep(x, Nx, Fp, matmul_dtype)
    h0_p = _prep(h0, Nr, Fp, h0.dtype)           # epilogue-only operand: keep full precision
    w_p = _prep(weight, Fp, Fp, matmul_dtype)

    # Weight block never changes across the grid; single-buffer it when wide so a
    # (Fp, Fp) W does not eat 2x VMEM (v7x has only 64 MiB).
    if Fp >= 512:
        w_spec = pl.BlockSpec((Fp, Fp), lambda i, k: (0, 0),
                              pipeline_mode=pl.Buffered(1))
    else:
        w_spec = pl.BlockSpec((Fp, Fp), lambda i, k: (0, 0))

    in_specs = [
        pl.BlockSpec(memory_space=pltpu.MemorySpace.SMEM),   # [theta, alpha]
        pl.BlockSpec((tm, tk), lambda i, k: (i, k)),         # adj row/contraction tile
        pl.BlockSpec((tk, Fp), lambda i, k: (k, 0)),         # x contraction tile
        pl.BlockSpec((tm, Fp), lambda i, k: (i, 0)),         # h0 row tile
        w_spec,                                              # full weight
    ]
    args = [scalars, adj_p, x_p, h0_p, w_p]
    if residual:
        # Reuse the same padded x buffer (no extra HBM copy), just row-tiled this time.
        in_specs.append(pl.BlockSpec((tm, Fp), lambda i, k: (i, 0)))
        args.append(x_p)

    kernel = functools.partial(_gcn_kernel, residual=residual)

    out_p = pl.pallas_call(
        kernel,
        out_shape=jax.ShapeDtypeStruct((Nr, Fp), x.dtype),
        grid_spec=pltpu.PrefetchScalarGridSpec(
            num_scalar_prefetch=0,
            grid=(Nr // tm, Nk // tk),
            in_specs=in_specs,
            out_specs=pl.BlockSpec((tm, Fp), lambda i, k: (i, 0)),
            scratch_shapes=[pltpu.VMEM((tm, Fp), jnp.float32)],
        ),
        compiler_params=pltpu.CompilerParams(
            dimension_semantics=("parallel", "arbitrary"),
            vmem_limit_bytes=_vmem_limit_bytes(),
        ),
    )(*args)

    if out_p.shape != (N, F_out):
        out_p = out_p[:N, :F_out]
    return out_p


def graph_convolution_ref(x, adj, h0, weight, lamda, alpha, l, *, residual=False):
    theta = math.log(lamda / l + 1.0)
    hi = adj @ x
    support = (1.0 - alpha) * hi + alpha * h0
    out = theta * (support @ weight) + (1.0 - theta) * support
    if residual:
        out = out + x
    return out


def _make_inputs(key, N, F):
    k_x, k_adj, k_h0, k_w = jax.random.split(key, 4)
    x = jax.random.normal(k_x, (N, F), dtype=jnp.float32)
    h0 = jax.random.normal(k_h0, (N, F), dtype=jnp.float32)

    # Symmetric-normalized dense adjacency (stand-in for the sparse adj in th.spmm).
    a = (jax.random.uniform(k_adj, (N, N)) < 0.1).astype(jnp.float32)
    a = jnp.maximum(a, a.T) + jnp.eye(N, dtype=jnp.float32)
    deg = jnp.sum(a, axis=1)
    d_inv_sqrt = 1.0 / jnp.sqrt(deg)
    adj = a * d_inv_sqrt[:, None] * d_inv_sqrt[None, :]

    # reset_parameters(): uniform(-stdv, stdv), stdv = 1/sqrt(out_features)
    stdv = 1.0 / math.sqrt(F)
    weight = jax.random.uniform(k_w, (F, F), minval=-stdv, maxval=stdv,
                                dtype=jnp.float32)
    return x, adj, h0, weight


if __name__ == "__main__":
    lamda, alpha = 0.5, 0.1
    key = jax.random.PRNGKey(0)
    k1, k2 = jax.random.split(key)

    # --- test 1: small shapes, f32 MXU path (exact), padding exercised everywhere ---
    N, F = 64, 32
    x, adj, h0, weight = _make_inputs(k1, N, F)
    out = graph_convolution(x, adj, h0, weight, lamda, alpha, 1,
                            residual=False, matmul_dtype=jnp.float32)
    out = jax.block_until_ready(out)
    ref = graph_convolution_ref(x, adj, h0, weight, lamda, alpha, 1, residual=False)
    assert out.shape == (N, F)
    assert jnp.allclose(out, ref, atol=1e-4, rtol=1e-4), "mismatch (f32, no residual)"

    # --- test 2: bf16 MXU path, residual reuse of x, multi-step contraction,
    #             tile-aligned shapes -> zero padding copies ---------------------------
    N2, F2 = 384, 256
    x2, adj2, h02, weight2 = _make_inputs(k2, N2, F2)
    out2 = graph_convolution(x2, adj2, h02, weight2, lamda, alpha, 2,
                             residual=True, matmul_dtype=jnp.bfloat16, tk=128)
    out2 = jax.block_until_ready(out2)
    ref2 = graph_convolution_ref(x2, adj2, h02, weight2, lamda, alpha, 2, residual=True)
    assert out2.shape == (N2, F2)
    max_err = float(jnp.max(jnp.abs(out2 - ref2)))
    assert jnp.allclose(out2, ref2, atol=6e-2, rtol=6e-2), f"mismatch (bf16, residual): {max_err}"

    print("KERNEL_OK")
</pallas_src>

<mosaic_0001>
module attributes {stable_mosaic.version = 11 : i64} {
  func.func @_gcn_kernel(%arg0: i32, %arg1: i32, %arg2: memref<2xf32, #tpu.memory_space<smem>>, %arg3: memref<32x128xf32, #tpu.memory_space<vmem>>, %arg4: memref<128x128xf32, #tpu.memory_space<vmem>>, %arg5: memref<32x128xf32, #tpu.memory_space<vmem>>, %arg6: memref<128x128xf32, #tpu.memory_space<vmem>>, %arg7: memref<32x128xf32, #tpu.memory_space<vmem>>, %arg8: memref<32x128xf32, #tpu.memory_space<vmem>>) attributes {dimension_semantics = [#tpu.dimension_semantics<parallel>, #tpu.dimension_semantics<arbitrary>], iteration_bounds = array<i64: 2, 1>, scalar_prefetch = 0 : i64, scratch_operands = 1 : i64, tpu.core_type = #tpu.core_type<tc>, window_params = [{transform_indices = @transform_0, window_bounds = array<i64: 2>}, {transform_indices = @transform_1, window_bounds = array<i64: 32, 128>}, {transform_indices = @transform_2, window_bounds = array<i64: 128, 128>}, {transform_indices = @transform_3, window_bounds = array<i64: 32, 128>}, {pipeline_mode = #tpu.pipeline_mode<synchronous>, transform_indices = @transform_4, window_bounds = array<i64: 128, 128>}, {transform_indices = @transform_5, window_bounds = array<i64: 32, 128>}]} {
    %c0_i32 = arith.constant 0 : i32
    %0 = arith.cmpi eq, %arg1, %c0_i32 : i32
    %1 = arith.extui %0 : i1 to i32
    %c0_i32_0 = arith.constant 0 : i32
    %2 = arith.cmpi ne, %1, %c0_i32_0 : i32
    scf.if %2 {
      %cst_10 = arith.constant 0.000000e+00 : f32
      %12 = vector.broadcast %cst_10 : f32 to vector<32x128xf32>
      %c0_11 = arith.constant 0 : index
      %c0_12 = arith.constant 0 : index
      %13 = vector.load %arg8[%c0_11, %c0_12] : memref<32x128xf32, #tpu.memory_space<vmem>>, vector<32x128xf32>
      tpu.vector_store %arg8[%c0_11, %c0_12], %12 {strides = array<i32>} : memref<32x128xf32, #tpu.memory_space<vmem>>, vector<32x128xf32>,
    } else {
    }
    %c0 = arith.constant 0 : index
    %c0_1 = arith.constant 0 : index
    %3 = vector.load %arg8[%c0, %c0_1] : memref<32x128xf32, #tpu.memory_space<vmem>>, vector<32x128xf32>
    %c0_2 = arith.constant 0 : index
    %c0_3 = arith.constant 0 : index
    %4 = vector.load %arg3[%c0_2, %c0_3] : memref<32x128xf32, #tpu.memory_space<vmem>>, vector<32x128xf32>
    %c0_4 = arith.constant 0 : index
    %c0_5 = arith.constant 0 : index
    %5 = vector.load %arg4[%c0_4, %c0_5] : memref<128x128xf32, #tpu.memory_space<vmem>>, vector<128x128xf32>
    %cst = arith.constant dense<0.000000e+00> : vector<32x128xf32>
    %6 = tpu.matmul %4, %5, %cst {dimension_numbers = #tpu.dot_dimension_numbers<[1], [0], [0], [1], [0, 0, 1, 1], [], []>} : vector<32x128xf32>, vector<128x128xf32>, vector<32x128xf32> -> vector<32x128xf32>
    %7 = arith.addf %3, %6 : vector<32x128xf32>
    %c0_6 = arith.constant 0 : index
    %c0_7 = arith.constant 0 : index
    %8 = vector.load %arg8[%c0_6, %c0_7] : memref<32x128xf32, #tpu.memory_space<vmem>>, vector<32x128xf32>
    tpu.vector_store %arg8[%c0_6, %c0_7], %7 {strides = array<i32>} : memref<32x128xf32, #tpu.memory_space<vmem>>, vector<32x128xf32>,
    %c0_i32_8 = arith.constant 0 : i32
    %9 = arith.cmpi eq, %arg1, %c0_i32_8 : i32
    %10 = arith.extui %9 : i1 to i32
    %c0_i32_9 = arith.constant 0 : i32
    %11 = arith.cmpi ne, %10, %c0_i32_9 : i32
    scf.if %11 {
      %c0_10 = arith.constant 0 : index
      %12 = memref.load %arg2[%c0_10] : memref<2xf32, #tpu.memory_space<smem>>
      %c1 = arith.constant 1 : index
      %13 = memref.load %arg2[%c1] : memref<2xf32, #tpu.memory_space<smem>>
      %c0_11 = arith.constant 0 : index
      %c0_12 = arith.constant 0 : index
      %14 = vector.load %arg8[%c0_11, %c0_12] : memref<32x128xf32, #tpu.memory_space<vmem>>, vector<32x128xf32>
      %cst_13 = arith.constant 1.000000e+00 : f32
      %15 = arith.subf %cst_13, %13 : f32
      %16 = vector.broadcast %15 : f32 to vector<32x128xf32>
      %17 = arith.mulf %16, %14 : vector<32x128xf32>
      %c0_14 = arith.constant 0 : index
      %c0_15 = arith.constant 0 : index
      %18 = vector.load %arg5[%c0_14, %c0_15] : memref<32x128xf32, #tpu.memory_space<vmem>>, vector<32x128xf32>
      %19 = vector.broadcast %13 : f32 to vector<32x128xf32>
      %20 = arith.mulf %19, %18 : vector<32x128xf32>
      %21 = arith.addf %17, %20 : vector<32x128xf32>
      %c0_16 = arith.constant 0 : index
      %c0_17 = arith.constant 0 : index
      %22 = vector.load %arg6[%c0_16, %c0_17] : memref<128x128xf32, #tpu.memory_space<vmem>>, vector<128x128xf32>
      %cst_18 = arith.constant dense<0.000000e+00> : vector<32x128xf32>
      %23 = tpu.matmul %21, %22, %cst_18 {dimension_numbers = #tpu.dot_dimension_numbers<[1], [0], [0], [1], [0, 0, 1, 1], [], []>} : vector<32x128xf32>, vector<128x128xf32>, vector<32x128xf32> -> vector<32x128xf32>
      %24 = vector.broadcast %12 : f32 to vector<32x128xf32>
      %25 = arith.mulf %24, %23 : vector<32x128xf32>
      %cst_19 = arith.constant 1.000000e+00 : f32
      %26 = arith.subf %cst_19, %12 : f32
      %27 = vector.broadcast %26 : f32 to vector<32x128xf32>
      %28 = arith.mulf %27, %21 : vector<32x128xf32>
      %29 = arith.addf %25, %28 : vector<32x128xf32>
      %c0_20 = arith.constant 0 : index
      %c0_21 = arith.constant 0 : index
      %30 = vector.load %arg7[%c0_20, %c0_21] : memref<32x128xf32, #tpu.memory_space<vmem>>, vector<32x128xf32>
      tpu.vector_store %arg7[%c0_20, %c0_21], %29 {strides = array<i32>} : memref<32x128xf32, #tpu.memory_space<vmem>>, vector<32x128xf32>,
    } else {
    }
    return
  }
  func.func @transform_0(%arg0: i32, %arg1: i32) -> i32 {
    %c0_i32 = arith.constant 0 : i32
    %c0_i32_0 = arith.constant 0 : i32
    return %c0_i32 : i32
  }
  func.func @transform_1(%arg0: i32, %arg1: i32) -> (i32, i32) {
    %c0_i32 = arith.constant 0 : i32
    return %arg0, %arg1 : i32, i32
  }
  func.func @transform_2(%arg0: i32, %arg1: i32) -> (i32, i32) {
    %c0_i32 = arith.constant 0 : i32
    %c0_i32_0 = arith.constant 0 : i32
    return %arg1, %c0_i32 : i32, i32
  }
  func.func @transform_3(%arg0: i32, %arg1: i32) -> (i32, i32) {
    %c0_i32 = arith.constant 0 : i32
    %c0_i32_0 = arith.constant 0 : i32
    return %arg0, %c0_i32 : i32, i32
  }
  func.func @transform_4(%arg0: i32, %arg1: i32) -> (i32, i32) {
    %c0_i32 = arith.constant 0 : i32
    %c0_i32_0 = arith.constant 0 : i32
    %c0_i32_1 = arith.constant 0 : i32
    return %c0_i32, %c0_i32_0 : i32, i32
  }
  func.func @transform_5(%arg0: i32, %arg1: i32) -> (i32, i32) {
    %c0_i32 = arith.constant 0 : i32
    %c0_i32_0 = arith.constant 0 : i32
    return %arg0, %c0_i32 : i32, i32
  }
}

</mosaic_0001>

<bundles_post_ra>
// kernel: tpu_custom_call.1
= control target key start
LH: loop header
LB: loop body
LE: loop exit
PB: predicated region body
PF: predicated region fallthrough
CT: control target
= control target key end

     0   :  { %s1690_s0 = inlined_call_operand.hbm [shape: f32[2], index: 0, kind: input, shape index: {}]   ;;  %s1691_s1 = inlined_call_operand.hbm [shape: f32[64,128], index: 1, kind: input, shape index: {}]   ;;  %s1692_s2 = inlined_call_operand.hbm [shape: f32[128,128], index: 2, kind: input, shape index: {}]   ;;  %s1693_s3 = inlined_call_operand.hbm [shape: f32[64,128], index: 3, kind: input, shape index: {}]   ;;  %s1694_s4 = inlined_call_operand.hbm [shape: f32[128,128], index: 4, kind: input, shape index: {}]   ;;  %s1695_s5 = inlined_call_operand.hbm [shape: f32[64,128], index: 5, kind: output, shape index: {}]  }
   0x1   :  { %1716 = sst [smem:[#allocation25_spill]] %s1691_s1 }
   0x2   :  { %1717 = sst [smem:[#allocation26_spill]] %s1692_s2 }
   0x3   :  { %10 = vsyncpa [#allocation6], 0 }
   0x4   :  { %11 = vsyncpa [#allocation4], 0 }
   0x5   :  { %13 = vsyncpa [#allocation4 + $0x1], 0 }
   0x6   :  { %14 = vsyncpa [#allocation9], 0 }
   0x7   :  { %15 = vsyncpa [#allocation5], 0 }
   0x8   :  { %17 = vsyncpa [#allocation5 + $0x1], 0  ;;  %s1351_s18 = smov 0   ;;  %s1353_s19 = smov 0  }
   0x9   :  { %s1355_s20 = smov 0   ;;  %s1357_s21 = smov 0  }
   0xa   :  { %s1359_s22 = smov 0   ;;  %s1361_s23 = smov 0  }
   0xb LB: > { %1718 = sst [smem:[#allocation19_spill]] %s1289_s18  ;;  %s1382_s24 = sadd.s32 4294967295, %s1309_s23   ;;  %s1309_s23 = sphi %s1361_s23, %s23_s23   ;;  %s1305_s22 = sphi %s1359_s22, %s1762_s22   ;;  %s1301_s21 = sphi %s1357_s21, %s1761_s21   ;;  %s1297_s20 = sphi %s1355_s20, %s1757_s20   ;;  %s1293_s19 = sphi %s1353_s19, %s1760_s19   ;;  %s1289_s18 = sphi %s1351_s18, %s1759_s18  }
   0xc   : > { %1719 = sst [smem:[#allocation20_spill]] %s1297_s20  ;;  %s772_s25 = sadd.s32 4294967294, %s1309_s23  }
   0xd   : > { %1720 = sst [smem:[#allocation21_spill]] %s1309_s23  ;;  %p78_p0 = scmp.ne.s32.totalorder %s1293_s19, %s1289_s18 }
   0xe   : > { %p1696_p1 = scmp.eq.s32.totalorder %s1382_s24, 0  ;;  %p181_p3 = scmp.eq.s32.totalorder %s772_s25, 1 }
   0xf   : > { %p773_p5 = scmp.ge.s32.totalorder %s1309_s23, 1  ;;  %p188_p7 = scmp.lt.s32.totalorder %s1309_s23, 3 }
  0x10   : > { %p1391_p4 = por %p1696_p1, %p78_p0  ;;  %p1396_p6 = por %p181_p3, %p78_p0 }
  0x11   : > { %p1401_p8 = pnand %p773_p5, %p188_p7  ;;  %s1311_s29 = smov [#allocation8]  }
  0x12   : > { %s1721_s26 = scalar_select %p1391_p4, 1, 0 }
  0x13   : > { %s1722_s27 = scalar_select %p1396_p6, 1, 0 }
  0x14   : > { %s1724_s28 = scalar_select %p1401_p8, 1, 0 }
  0x15   : > { %1723 = sst [smem:[#allocation22_spill]] %s1722_s27  ;;  %s212_s30 = sshll.u32 %s1311_s29, 4  ;;  %s213_s30 = int_to_ptr.vmem [resolvable:$true] %s212_s30 }
  0x16   : > { %p998_p9 = pneg %p1401_p8  ;;  %s35_s7 = sadd.s32 1, %s1305_s22 }
  0x17   : > { %s1726_s2 = sld [smem:[#allocation26_spill]] }
  0x18   : > { %p1410_p11 = pnand %p998_p9, %p1696_p1 }
  0x1a   : > { %s1725_s6 = scalar_select %p1410_p11, 1, 0 }
  0x1b   : > { %p1423_p13 = pneg %p1410_p11 }
  0x1d   : > { %s1082_s10 = scalar_lea.hbm %s1726_s2, 2048 }
  0x1e   : > { %p1083_p12 = scmp.ne.s32.totalorder %s1726_s2, %s1082_s10  ;;  %p1089_p5 = scmp.lt.u32.totalorder %s1082_s10, %s1726_s2 }
  0x20   : > { %p1085_p0 = pnand %p1423_p13, %p1083_p12 }
  0x22   : > { %p1086_p3 = pneg %p1085_p0 }
  0x24   : > { %p1091_p7 = pnand %p1089_p5, %p1086_p3 }
  0x26   : > { %1094 = shalt.err (!%p1091_p7)
}
  0x27   : > { %s1095_s16 = scalar_lea.vmem %s213_s30, 2048  ;;  %p1103_p2 = scmp.lt.s32.totalorder %s213_s30, %s213_s30 }
  0x28   : > { %p1096_p9 = scmp.ne.s32.totalorder %s213_s30, %s1095_s16  ;;  %p1104_p6 = scmp.lt.s32.totalorder %s1095_s16, %s1095_s16 }
  0x2a   : > { %p1098_p10 = pnand %p1096_p9, %p1423_p13  ;;  %p1105_p4 = por %p1104_p6, %p1103_p2 }
  0x2c   : > { %p1099_p1 = pneg %p1098_p10 }
  0x2e   : > { %p1106_p8 = pnand %p1105_p4, %p1099_p1 }
  0x30   : > { %1109 = shalt.err (!%p1106_p8)
}
  0x31   : > { %s1699_s17 = smov 128   ;;  %s1701_s25 = smov 8  }
  0x32   : > { %1004 = dma.hbm_to_vmem [thread:$0]  (!%p1410_p11), %s1726_s2, 2048, %s213_s30, [#allocation9], %s1699_s17, %s1699_s17, %s1701_s25  }
  0x33   : > { %p37_p1 = scmp.ge.s32.totalorder %s35_s7, 2  ;;  %s65_s9 = sadd.s32 1, %s1297_s20 }
  0x34   : > { %p72_p2 = scmp.ne.s32.totalorder %s1297_s20, %s1293_s19  ;;  %p73_p4 = scmp.eq.s32.totalorder %s1309_s23, 0 }
  0x35   : > { %s1764_s7 = smov (%p37_p1, %s35_s7), 0  ;;  %p1730_p8 = scmp.eq.s32.totalorder %s1382_s24, 1 }
  0x36   : > { %1728 = sst [smem:[#allocation23_spill]] %s1764_s7  ;;  %p1448_p6 = por %p73_p4, %p72_p2 }
  0x37   : > { %p1454_p10 = por %p1730_p8, %p72_p2  ;;  %s60_s12 = ssub.s32 %s1305_s22, %s1764_s7 }
  0x38   : > { %p1022_p12 = scmp.lt.s32.totalorder %s1309_s23, 2  ;;  %p63_p0 = scmp.eq.s32.totalorder %s60_s12, 0 }
  0x39   : > { %s1731_s11 = scalar_select %p1454_p10, 1, 0 }
  0x3a   : > { %s239_s30 = sand.u32 1, %s1309_s23   ;;  %s241_s14 = sand.u32 1, %s1297_s20  }
  0x3b   : > { %s1464_s15 = scalar_select %p63_p0, %s1297_s20, %s65_s9  }
  0x3c   : > { %s1466_s16 = sshll.u32 %s241_s14, 5  ;;  %s1703_s29 = sshll.u32 %s1305_s22, 9 }
  0x3d   : > { %1732 = sst [smem:[#allocation24_spill]] %s1464_s15  ;;  %s1733_s1 = sld [smem:[#allocation25_spill]] }
  0x3e   : > { %s243_s2 = scalar_lea.vmem [#allocation7], %s1466_s16  ;;  %p1479_p3 = pnand %p1022_p12, %p1448_p6 }
  0x3f   : > { %s251_s12 = sshll.u32 %s243_s2, 4  ;;  %s1485_s14 = scalar_lea.sflag [#allocation4], %s239_s30  ;;  %s1483_s12 = int_to_ptr.vmem [resolvable:$true] %s251_s12 }
  0x40   : > { %s1734_s9 = scalar_select %p1479_p3, 1, 0 }
  0x41   : > { %p1713_p7 = pneg %p1479_p3 }
  0x43   : > { %s1474_s25 = scalar_lea.hbm %s1733_s1, %s1703_s29  ;;  %s1115_s8 = scalar_lea.hbm %s1733_s1, 1024 }
  0x44   : > { %s1110_s17 = scalar_lea.hbm %s1474_s25, 512  ;;  %p1116_p2 = scmp.lt.u32.totalorder %s1474_s25, %s1733_s1 }
  0x45   : > { %p1111_p5 = scmp.ne.s32.totalorder %s1474_s25, %s1110_s17  ;;  %p1117_p4 = scmp.lt.u32.totalorder %s1115_s8, %s1110_s17 }
  0x46   : > { %p1119_p8 = scmp.lt.u32.totalorder %s1110_s17, %s1474_s25 }
  0x47   : > { %p1113_p9 = pnand %p1713_p7, %p1111_p5  ;;  %p1118_p6 = por %p1117_p4, %p1116_p2 }
  0x49   : > { %p1114_p1 = pneg %p1113_p9  ;;  %p1120_p12 = por %p1119_p8, %p1118_p6 }
  0x4b   : > { %p1121_p0 = pnand %p1120_p12, %p1114_p1 }
  0x4d   : > { %1124 = shalt.err (!%p1121_p0)
}
  0x4e   : > { %s1125_s30 = scalar_lea.vmem %s1483_s12, 512  ;;  %s1314_s2 = smov [#allocation7]  }
  0x4f   : > { %p1126_p5 = scmp.ne.s32.totalorder %s1483_s12, %s1125_s30  ;;  %s1130_s10 = sshll.u32 %s1314_s2, 4  ;;  %s1131_s10 = int_to_ptr.vmem [resolvable:$false] %s1130_s10 }
  0x50   : > { %s1132_s7 = scalar_lea.vmem %s1131_s10, 1024  ;;  %p1133_p11 = scmp.lt.s32.totalorder %s1483_s12, %s1131_s10 }
  0x51   : > { %p1128_p9 = pnand %p1126_p5, %p1713_p7  ;;  %p1134_p2 = scmp.lt.s32.totalorder %s1132_s7, %s1125_s30 }
  0x53   : > { %p1129_p10 = pneg %p1128_p9  ;;  %p1135_p4 = por %p1134_p2, %p1133_p11 }
  0x55   : > { %p1136_p6 = pnand %p1135_p4, %p1129_p10 }
  0x57   : > { %1139 = shalt.err (!%p1136_p6)
}
  0x58   : > { %s1735_s29 = smov 8   ;;  %s1736_s17 = smov 128  }
  0x59   : > { %1011 = dma.hbm_to_vmem [thread:$0]  (!%p1479_p3), %s1474_s25, 512, %s1483_s12, %s1485_s14, %s1736_s17, %s1736_s17, %s1735_s29  }
  0x5a   : > { %s1737_s8 = sshll.u32 %s1305_s22, 9  ;;  %s265_s10 = scalar_lea.vmem [#allocation10], %s1466_s16 }
  0x5b   : > { %s1521_s30 = scalar_lea.hbm %s1693_s3, %s1737_s8  ;;  %s272_s7 = sshll.u32 %s265_s10, 4  ;;  %s1540_s7 = int_to_ptr.vmem [resolvable:$true] %s272_s7 }
  0x5c   : > { %s1140_s23 = scalar_lea.hbm %s1690_s0, 16 }
  0x5d   : > { %p1141_p11 = scmp.ne.s32.totalorder %s1690_s0, %s1140_s23  ;;  %p1147_p8 = scmp.lt.u32.totalorder %s1140_s23, %s1690_s0 }
  0x5f   : > { %p1143_p10 = pnand %p1141_p11, %p1423_p13 }
  0x61   : > { %p1144_p1 = pneg %p1143_p10 }
  0x63   : > { %p1149_p12 = pnand %p1147_p8, %p1144_p1 }
  0x65   : > { %1152 = shalt.err (!%p1149_p12)
}
  0x66   : > { %s1315_s1 = smov [#allocation3]   ;;  %p1738_p0 = scmp.ne.s32.totalorder %s1725_s6, 0 }
  0x67   : > { %s1316_s18 = smov [#allocation11]   ;;  %s1153_s2 = scalar_lea.hbm %s1694_s4, 2048 }
  0x68   : > { %1001 = dma.hbm_to_smem (!%p1738_p0), %s1690_s0, 16, %s1315_s1, [#allocation6]  }
  0x69   : > { %s225_s20 = sshll.u32 %s1316_s18, 4  ;;  %p1154_p5 = scmp.ne.s32.totalorder %s1694_s4, %s1153_s2  ;;  %s226_s20 = int_to_ptr.vmem [resolvable:$true] %s225_s20 }
  0x6a   : > { %p1160_p4 = scmp.lt.u32.totalorder %s1153_s2, %s1694_s4 }
  0x6b   : > { %p1156_p9 = pnand %p1154_p5, %p1423_p13 }
  0x6d   : > { %p1157_p2 = pneg %p1156_p9 }
  0x6f   : > { %p1162_p6 = pnand %p1160_p4, %p1157_p2 }
  0x71   : > { %1165 = shalt.err (!%p1162_p6)
}
  0x72   : > { %s1166_s1 = scalar_lea.vmem %s226_s20, 2048  ;;  %p1174_p8 = scmp.lt.s32.totalorder %s226_s20, %s226_s20 }
  0x73   : > { %p1167_p11 = scmp.ne.s32.totalorder %s226_s20, %s1166_s1  ;;  %p1175_p12 = scmp.lt.s32.totalorder %s1166_s1, %s1166_s1 }
  0x75   : > { %p1169_p10 = pnand %p1167_p11, %p1423_p13  ;;  %p1176_p7 = por %p1175_p12, %p1174_p8 }
  0x77   : > { %p1170_p1 = pneg %p1169_p10 }
  0x79   : > { %p1177_p3 = pnand %p1176_p7, %p1170_p1 }
  0x7b   : > { %1180 = shalt.err (!%p1177_p3)
}
  0x7c   : > { %1007 = dma.hbm_to_vmem [thread:$0]  (!%p1738_p0), %s1694_s4, 2048, %s226_s20, [#allocation9], %s1736_s17, %s1736_s17, %s1735_s29  }
  0x7d   : > { %s1181_s13 = scalar_lea.hbm %s1521_s30, 512  ;;  %p1739_p5 = scmp.ne.s32.totalorder %s1734_s9, 0 }
  0x7e   : > { %p1182_p13 = scmp.ne.s32.totalorder %s1521_s30, %s1181_s13  ;;  %s1186_s27 = scalar_lea.hbm %s1693_s3, 1024 }
  0x7f   : > { %p1740_p9 = pneg %p1739_p5  ;;  %p1187_p2 = scmp.lt.u32.totalorder %s1521_s30, %s1693_s3 }
  0x80   : > { %p1188_p4 = scmp.lt.u32.totalorder %s1186_s27, %s1181_s13  ;;  %p1190_p11 = scmp.lt.u32.totalorder %s1181_s13, %s1521_s30 }
  0x81   : > { %p1184_p7 = pnand %p1182_p13, %p1740_p9 }
  0x82   : > { %p1189_p6 = por %p1188_p4, %p1187_p2 }
  0x83   : > { %p1185_p3 = pneg %p1184_p7 }
  0x84   : > { %p1191_p10 = por %p1190_p11, %p1189_p6 }
  0x86   : > { %p1192_p1 = pnand %p1191_p10, %p1185_p3 }
  0x88   : > { %1195 = shalt.err (!%p1192_p1)
}
  0x89   : > { %s1196_s20 = scalar_lea.vmem %s1540_s7, 512  ;;  %p1741_p8 = pmov %p1740_p9 }
  0x8a   : > { %p1197_p0 = scmp.ne.s32.totalorder %s1540_s7, %s1196_s20  ;;  %s1317_s23 = smov [#allocation10]  }
  0x8b   : > { %s1201_s10 = sshll.u32 %s1317_s23, 4  ;;  %s1202_s10 = int_to_ptr.vmem [resolvable:$false] %s1201_s10 }
  0x8c   : > { %p1199_p12 = pnand %p1197_p0, %p1741_p8  ;;  %s1203_s25 = scalar_lea.vmem %s1202_s10, 1024 }
  0x8d   : > { %p1204_p9 = scmp.lt.s32.totalorder %s1540_s7, %s1202_s10  ;;  %p1205_p7 = scmp.lt.s32.totalorder %s1203_s25, %s1196_s20 }
  0x8e   : > { %p1200_p13 = pneg %p1199_p12 }
  0x8f   : > { %p1206_p2 = por %p1205_p7, %p1204_p9 }
  0x91   : > { %p1207_p4 = pnand %p1206_p2, %p1200_p13 }
  0x93   : > { %1210 = shalt.err (!%p1207_p4)
}
  0x94   : > { %1014 = dma.hbm_to_vmem [thread:$0]  (!%p1739_p5), %s1521_s30, 512, %s1540_s7, %s1485_s14, %s1736_s17, %s1736_s17, %s1735_s29  }
  0x95   : > { %p1742_p3 = scmp.ne.s32.totalorder %s1724_s28, 0 }
  0x96   : > { %p1743_p6 = scmp.eq.s32.totalorder (!%p1742_p3), %s1382_s24, 0 }
  0x97   : > { %284 = sbr.rel (%p1742_p3) target bundleno = 664 (0x298), region = 40 }
  0x9e   : > { %1264 = dma.done.wait (%p1743_p6), [#allocation6], 16   ;;  %p1744_p11 = pmov %p1743_p6 }
  0x9f   : > { %s290_s9 = sand.u32 1, %s1382_s24   ;;  %s292_s12 = sand.u32 1, %s1293_s19  }
  0xa0   : > { %1266 = vsyncadd (%p1744_p11), [#allocation6], 4294967280  ;;  %s1600_s1 = sshll.u32 %s292_s12, 5  ;;  %s291_s14 = scalar_lea.sflag [#allocation4], %s290_s9 }
  0xa1   : > { %s1603_s29 = scalar_lea.vmem [#allocation7], %s1600_s1  ;;  %p1745_p5 = scmp.ne.s32.totalorder %s1721_s26, 0 }
  0xa3   : > { %1268 = dma.done.wait (%p1745_p5), %s291_s14, 512  }
  0xa4   : > { %1270 = vsyncadd (%p1745_p5), %s291_s14, 4294966784  ;;  %p1746_p10 = pmov %p1743_p6 }
  0xa5   : > { %p1747_p1 = pmov %p1743_p6 }
  0xa6   : > { %1272 = dma.done.wait (%p1746_p10), [#allocation9], 2048  }
  0xa7   : > { %1274 = vsyncadd (%p1747_p1), [#allocation9], 4294965248  ;;  %s1614_s28 = scalar_lea.vmem [#allocation10], %s1600_s1 }
  0xa8   : > { %1276 = dma.done.wait (%p1745_p5), %s291_s14, 512  }
  0xa9   : > { %1278 = vsyncadd (%p1745_p5), %s291_s14, 4294966784  ;;  %p1748_p0 = pmov %p1747_p1 }
  0xab   : > { %1280 = dma.done.wait (%p1748_p0), [#allocation9], 2048   ;;  %p1749_p8 = pmov %p1748_p0 }
  0xad   : > { %1282 = vsyncadd (%p1749_p8), [#allocation9], 4294965248 }
  0xae   : > { %316 = sfence }
  0xaf   : > { %v364_v0 = vld [vmem:[#allocation8] sm:$0xff]  ;;  %v365_v1 = vld [vmem:[#allocation8 + $0x8] sm:$0xff]  ;;  %v366_v2 = vld [vmem:[#allocation8 + $0x10] sm:$0xff]  ;;  %s791_s24 = sld [smem:[#allocation3 + $0x1]]  ;;  %s476_s17 = sld [smem:[#allocation3]] }
  0xb0   : > { %v916_v3 = vpack.c.bf16 %v365_v1, %v364_v0  ;;  %v367_v4 = vld [vmem:[#allocation8 + $0x18] sm:$0xff]  ;;  %v368_v6 = vld [vmem:[#allocation8 + $0x20] sm:$0xff]  ;;  %v369_v7 = vld [vmem:[#allocation8 + $0x28] sm:$0xff]  ;;  %s343_s7 = scalar_lea.vmem [#allocation12], %s1600_s1  ;;  %s799_s8 = sshll.u32 %s1301_s21, 9 }
  0xb1   : > { %v920_v5 = vpack.c.bf16 %v367_v4, %v366_v2  ;;  %v924_v8 = vpack.c.bf16 %v369_v7, %v368_v6  ;;  %v360_v9 = vld [vmem:[%s1603_s29] sm:$0xff]  ;;  %v370_v10 = vld [vmem:[#allocation8 + $0x30] sm:$0xff]  ;;  %v371_v11 = vld [vmem:[#allocation8 + $0x38] sm:$0xff]  ;;  %s635_s16 = sshll.u32 %s343_s7, 4  ;;  %s1639_s6 = scalar_lea.hbm %s1695_s5, %s799_s8  ;;  %s1634_s16 = int_to_ptr.vmem [resolvable:$true] %s635_s16 }
  0xb2   : > { %917 = vmatprep.subr.bf16.mxu0 %v916_v3  ;;  %872 = vmatprep.mubr.f32.mxu0 %v360_v9  ;;  %v501_v12 = vld [vmem:[#allocation11] sm:$0xff]  ;;  %v502_v13 = vld [vmem:[#allocation11 + $0x8] sm:$0xff]  ;;  %v503_v14 = vld [vmem:[#allocation11 + $0x10] sm:$0xff]  ;;  %v928_v18 = vpack.c.bf16 %v371_v11, %v370_v10  ;;  %s1643_s21 = scalar_lea.sflag [#allocation5], %s292_s12  ;;  %s1211_s27 = scalar_lea.vmem %s1634_s16, 512 }
  0xb3   : > { %919 = vmatpush3.bf16.msra.mxu0 %v916_v3  ;;  %v504_v15 = vld [vmem:[#allocation11 + $0x18] sm:$0xff]  ;;  %v948_v16 = vpack.c.bf16 %v502_v13, %v501_v12  ;;  %v505_v19 = vld [vmem:[#allocation11 + $0x20] sm:$0xff]  ;;  %v506_v20 = vld [vmem:[#allocation11 + $0x28] sm:$0xff]  ;;  %p1212_p12 = scmp.ne.s32.totalorder %s1634_s16, %s1211_s27  ;;  %p1750_p13 = scmp.ne.s32.totalorder %s1731_s11, 0 }
  0xb4   : > { %921 = vmatprep.subr.bf16.mxu0 %v920_v5  ;;  %v952_v17 = vpack.c.bf16 %v504_v15, %v503_v14  ;;  %v372_v21 = vld [vmem:[#allocation8 + $0x40] sm:$0xff]  ;;  %v373_v22 = vld [vmem:[#allocation8 + $0x48] sm:$0xff]  ;;  %v956_v23 = vpack.c.bf16 %v506_v20, %v505_v19  ;;  %v507_v25 = vld [vmem:[#allocation11 + $0x30] sm:$0xff]  ;;  %s1318_s15 = smov [#allocation12]  }
  0xb5   : > { %949 = vmatprep.subr.bf16.mxu1 %v948_v16  ;;  %v932_v24 = vpack.c.bf16 %v373_v22, %v372_v21  ;;  %v508_v26 = vld [vmem:[#allocation11 + $0x38] sm:$0xff]  ;;  %v374_v27 = vld [vmem:[#allocation8 + $0x50] sm:$0xff]  ;;  %v509_v31 = vld [vmem:[#allocation11 + $0x40] sm:$0xff]  ;;  %s482_s26 = ssub.f32 1.0, %s791_s24  ;;  %v492_v52 = vstv %s791_s24  ;;  %v602_v11 = vstv %s476_s17  ;;  %p1213_p9 = pnand %p1212_p12, %p1750_p13 }
  0xb6   : > { %951 = vmatpush3.bf16.msra.mxu1 %v948_v16  ;;  %v375_v28 = vld [vmem:[#allocation8 + $0x58] sm:$0xff]  ;;  %v960_v29 = vpack.c.bf16 %v508_v26, %v507_v25  ;;  %v510_v32 = vld [vmem:[#allocation11 + $0x48] sm:$0xff]  ;;  %v376_v33 = vld [vmem:[#allocation8 + $0x60] sm:$0xff]  ;;  %s607_s30 = ssub.f32 1.0, %s476_s17  ;;  %s1215_s2 = sshll.u32 %s1318_s15, 4  ;;  %s1216_s2 = int_to_ptr.vmem [resolvable:$false] %s1215_s2 }
  0xb7   : > { %923 = vmatpush3.bf16.msra.mxu0 %v920_v5  ;;  %953 = vmatprep.subr.bf16.mxu1 %v952_v17  ;;  %v936_v30 = vpack.c.bf16 %v375_v28, %v374_v27  ;;  %v377_v34 = vld [vmem:[#allocation8 + $0x68] sm:$0xff]  ;;  %v964_v35 = vpack.c.bf16 %v510_v32, %v509_v31  ;;  %v511_v37 = vld [vmem:[#allocation11 + $0x50] sm:$0xff]  ;;  %v512_v38 = vld [vmem:[#allocation11 + $0x58] sm:$0xff]  ;;  %v483_v54 = vstv %s482_s26  ;;  %p1214_p7 = pneg %p1213_p9  ;;  %s1217_s20 = scalar_lea.vmem %s1216_s2, 1024 }
  0xb8   : > { %925 = vmatprep.subr.bf16.mxu0 %v924_v8  ;;  %v940_v36 = vpack.c.bf16 %v377_v34, %v376_v33  ;;  %v378_v39 = vld [vmem:[#allocation8 + $0x70] sm:$0xff]  ;;  %v379_v40 = vld [vmem:[#allocation8 + $0x78] sm:$0xff]  ;;  %v968_v41 = vpack.c.bf16 %v512_v38, %v511_v37  ;;  %v513_v43 = vld [vmem:[#allocation11 + $0x60] sm:$0xff]  ;;  %v608_v10 = vstv %s607_s30  ;;  %p1218_p2 = scmp.lt.s32.totalorder %s1634_s16, %s1216_s2  ;;  %p1219_p4 = scmp.lt.s32.totalorder %s1217_s20, %s1211_s27 }
  0xb9   : > { %v944_v42 = vpack.c.bf16 %v379_v40, %v378_v39  ;;  %v514_v44 = vld [vmem:[#allocation11 + $0x68] sm:$0xff]  ;;  %v362_v47 = vld [vmem:[%s1603_s29 + $0x10] sm:$0xff]  ;;  %v363_v48 = vld [vmem:[%s1603_s29 + $0x18] sm:$0xff] }
  0xba   : > { %955 = vmatpush3.bf16.msra.mxu1 %v952_v17  ;;  %v972_v45 = vpack.c.bf16 %v514_v44, %v513_v43  ;;  %v361_v46 = vld [vmem:[%s1603_s29 + $0x8] sm:$0xff]  ;;  %v515_v49 = vld [vmem:[#allocation11 + $0x70] sm:$0xff]  ;;  %v516_v50 = vld [vmem:[#allocation11 + $0x78] sm:$0xff]  ;;  %p1220_p3 = por %p1219_p4, %p1218_p2 }
  0xbb   : > { %927 = vmatpush3.bf16.msra.mxu0 %v924_v8  ;;  %957 = vmatprep.subr.bf16.mxu1 %v956_v23  ;;  %v976_v51 = vpack.c.bf16 %v516_v50, %v515_v49  ;;  %v488_v53 = vld [vmem:[%s1614_s28] sm:$0xff]  ;;  %v489_v55 = vld [vmem:[%s1614_s28 + $0x8] sm:$0xff]  ;;  %v490_v61 = vld [vmem:[%s1614_s28 + $0x10] sm:$0xff] }
  0xbc   : > { %929 = vmatprep.subr.bf16.mxu0 %v928_v18  ;;  %v493_v57 = vmul.f32 %v492_v52, %v488_v53  ;;  %v494_v59 = vmul.f32 %v492_v52, %v489_v55  ;;  %v491_v63 = vld [vmem:[%s1614_s28 + $0x18] sm:$0xff]  ;;  %v495_v1 = vmul.f32 %v492_v52, %v490_v61  ;;  %p1221_p6 = pnand %p1220_p3, %p1214_p7 }
  0xbd   : > { %v496_v5 = vmul.f32 %v492_v52, %v491_v63 }
  0xbe   : > { %959 = vmatpush3.bf16.msra.mxu1 %v956_v23 }
  0xbf   : > { %931 = vmatpush3.bf16.msra.mxu0 %v928_v18  ;;  %961 = vmatprep.subr.bf16.mxu1 %v960_v29 }
  0xc0   : > { %933 = vmatprep.subr.bf16.mxu0 %v932_v24 }
  0xc2   : > { %963 = vmatpush3.bf16.msra.mxu1 %v960_v29 }
  0xc3   : > { %935 = vmatpush3.bf16.msra.mxu0 %v932_v24  ;;  %965 = vmatprep.subr.bf16.mxu1 %v964_v35 }
  0xc4   : > { %937 = vmatprep.subr.bf16.mxu0 %v936_v30 }
  0xc6   : > { %967 = vmatpush3.bf16.msra.mxu1 %v964_v35 }
  0xc7   : > { %939 = vmatpush3.bf16.msra.mxu0 %v936_v30  ;;  %969 = vmatprep.subr.bf16.mxu1 %v968_v41 }
  0xc8   : > { %941 = vmatprep.subr.bf16.mxu0 %v940_v36 }
  0xca   : > { %971 = vmatpush3.bf16.msra.mxu1 %v968_v41 }
  0xcb   : > { %943 = vmatpush3.bf16.msra.mxu0 %v940_v36  ;;  %973 = vmatprep.subr.bf16.mxu1 %v972_v45 }
  0xcc   : > { %945 = vmatprep.subr.bf16.mxu0 %v944_v42 }
  0xce   : > { %975 = vmatpush3.bf16.msra.mxu1 %v972_v45 }
  0xcf   : > { %947 = vmatpush3.bf16.msra.mxu0 %v944_v42  ;;  %977 = vmatprep.subr.bf16.mxu1 %v976_v51 }
  0xd2   : > { %873 = vmatmul.mubr.f32.vlgmr.msra.gmra.mrb[0].mxu0 %v361_v46  ;;  %979 = vmatpush3.bf16.msra.mxu1 %v976_v51 }
  0xd3   : > { %875 = vmatprep.mubr.f32.mxu0 %v362_v47 }
  0xd6   : > { %876 = vmatmul.mubr.f32.gmra.mrb[2].mxu0 %v363_v48 }
 0x1a5   : > { %v874_v56 = vpop.f32.mrb[0].mxu0 }
 0x1a6   : > { %v485_v58 = vmul.f32 %v874_v56, %v483_v54  ;;  %v446_v60 = vpop.f32.mrb[1].mxu0 }
 0x1a7   : > { %v484_v62 = vmul.f32 %v483_v54, %v446_v60 }
 0x1a8   : > { %v498_v3 = vadd.f32 %v494_v59, %v485_v58 }
 0x1a9   : > { %v877_v0 = vpop.f32.mrb[2].mxu0  ;;  %v497_v2 = vadd.f32 %v493_v57, %v484_v62 }
 0x1aa   : > { %v487_v4 = vmul.f32 %v877_v0, %v483_v54  ;;  %v456_v6 = vpop.f32.mrb[3].mxu0  ;;  %v610_v14 = vmul.f32 %v608_v10, %v498_v3 }
 0x1ab   : > { %v486_v7 = vmul.f32 %v483_v54, %v456_v6  ;;  %910 = vmatprep.mubr.f32.mxu1 %v497_v2  ;;  %v609_v16 = vmul.f32 %v608_v10, %v497_v2 }
 0x1ac   : > { %911 = vmatmul.mubr.f32.vlgmr.msra.gmra.mrb[0].mxu1 %v498_v3  ;;  %v500_v9 = vadd.f32 %v496_v5, %v487_v4 }
 0x1ad   : > { %v499_v8 = vadd.f32 %v495_v1, %v486_v7 }
 0x1ae   : > { %v612_v22 = vmul.f32 %v608_v10, %v500_v9 }
 0x1af   : > { %913 = vmatprep.mubr.f32.mxu1 %v499_v8  ;;  %v611_v25 = vmul.f32 %v608_v10, %v499_v8 }
 0x1b0   : > { %914 = vmatmul.mubr.f32.gmra.mrb[2].mxu1 %v500_v9 }
 0x27f   : > { %v912_v12 = vpop.f32.mrb[0].mxu1 }
 0x280   : > { %v604_v13 = vmul.f32 %v912_v12, %v602_v11  ;;  %v583_v15 = vpop.f32.mrb[1].mxu1 }
 0x281   : > { %v603_v17 = vmul.f32 %v602_v11, %v583_v15 }
 0x282   : > { %v614_v18 = vadd.f32 %v610_v14, %v604_v13 }
 0x283   : > { %v613_v19 = vadd.f32 %v609_v16, %v603_v17  ;;  %v915_v20 = vpop.f32.mrb[2].mxu1 }
 0x284   : > { %618 = vst [vmem:[%s343_s7 + $0x8] sm:$0xff] %v614_v18  ;;  %v606_v21 = vmul.f32 %v915_v20, %v602_v11  ;;  %v593_v23 = vpop.f32.mrb[3].mxu1 }
 0x285   : > { %617 = vst [vmem:[%s343_s7] sm:$0xff] %v613_v19  ;;  %v605_v24 = vmul.f32 %v602_v11, %v593_v23 }
 0x286   : > { %v616_v26 = vadd.f32 %v612_v22, %v606_v21 }
 0x287   : > { %v615_v27 = vadd.f32 %v611_v25, %v605_v24 }
 0x288   : > { %620 = vst [vmem:[%s343_s7 + $0x18] sm:$0xff] %v616_v26 }
 0x289   : > { %619 = vst [vmem:[%s343_s7 + $0x10] sm:$0xff] %v615_v27 }
 0x28a   : > { %1224 = shalt.err (!%p1221_p6)
}
 0x28b   : > { %s1225_s23 = scalar_lea.hbm %s1639_s6, 512  ;;  %s1229_s9 = scalar_lea.hbm %s1695_s5, 1024 }
 0x28c   : > { %p1226_p11 = scmp.ne.s32.totalorder %s1639_s6, %s1225_s23  ;;  %p1230_p1 = scmp.lt.u32.totalorder %s1639_s6, %s1695_s5 }
 0x28d   : > { %p1231_p0 = scmp.lt.u32.totalorder %s1229_s9, %s1225_s23  ;;  %p1233_p12 = scmp.lt.u32.totalorder %s1225_s23, %s1639_s6 }
 0x28e   : > { %p1227_p5 = pnand %p1226_p11, %p1750_p13 }
 0x28f   : > { %p1232_p8 = por %p1231_p0, %p1230_p1 }
 0x290   : > { %p1228_p10 = pneg %p1227_p5 }
 0x291   : > { %p1234_p9 = por %p1233_p12, %p1232_p8 }
 0x293   : > { %p1235_p7 = pnand %p1234_p9, %p1228_p10 }
 0x295   : > { %1238 = shalt.err (!%p1235_p7)
}
 0x296   : > { %s1319_s14 = smov 128   ;;  %s1320_s29 = smov 8  }
 0x297   : > { %996 = dma.vmem_to_hbm [thread:$0]  (%p1750_p13), %s1634_s16, 512, %s1639_s6, %s1643_s21, %s1319_s14, %s1319_s14, %s1320_s29  }
 0x298 PF: > { %s1751_s28 = sld [smem:[#allocation19_spill]]  ;;  %s1752_s24 = sld [smem:[#allocation22_spill]] }
 0x299   : > { %s1753_s26 = sld [smem:[#allocation21_spill]] }
 0x29e   : > { %s650_s17 = sand.u32 1, %s1751_s28   ;;  %p1754_p2 = scmp.ne.s32.totalorder %s1752_s24, 0 }
 0x29f   : > { %p1755_p4 = scmp.ge.s32.totalorder %s1753_s26, 2  ;;  %s651_s30 = scalar_lea.sflag [#allocation5], %s650_s17 }
 0x2a1   : > { %p1016_p3 = pnand %p1755_p4, %p1754_p2 }
 0x2a3   : > { %1284 = dma.done.wait (!%p1016_p3), %s651_s30, 512  }
 0x2a4   : > { %1286 = vsyncadd (!%p1016_p3), %s651_s30, 4294966784  ;;  %s23_s23 = sadd.s32 1, %s1753_s26   ;;  %s1756_s7 = sld [smem:[#allocation20_spill]] }
 0x2a5   : > { %p20_p6 = scmp.ge.s32.totalorder %s23_s23, 4   ;;  %s1757_s20 = sld [smem:[#allocation24_spill]] }
 0x2a6   : > { %s1758_s11 = sld [smem:[#allocation23_spill]]  ;;  %s1759_s18 = smov %s1293_s19 }
 0x2a7   : > { %s1761_s21 = smov %s1305_s22  ;;  %22 = sbr.rel (!%p20_p6) target bundleno = 11 (0xb), region = 118 }
 0x2aa   : > { %s1760_s19 = smov %s1756_s7 }
 0x2ac   : > { %s1762_s22 = smov %s1758_s11 }
 0x2ae   :  { %656 = vsyncpa [#allocation4], 1 }
 0x2af   :  { %658 = vsyncpa [#allocation4 + $0x1], 1 }
 0x2b0   :  { %659 = vsyncpa [#allocation9], 1 }
 0x2b1   :  { %660 = vsyncpa [#allocation5], 1 }
 0x2b2   :  { %662 = vsyncpa [#allocation5 + $0x1], 1 }
 0x2b3   :  { %663 = vsyncpa [#allocation6], 1 }
 0x2b4   :  { %665 = vsyncpa [#allocation6 + $0x1], 1 }

</bundles_post_ra>
